<compile_context>
chip_gen: v7x
topology: tpu7x:2x2x1
jax: 0.10.0
libtpu: 0.0.40
codegen_flags: <defaults>
</compile_context>

<pallas_src>
import jax
import jax.numpy as jnp
from jax.experimental import pallas as pl
from jax.experimental.pallas import tpu as pltpu

_H1 = 256
_H2 = 64
_HEAD = 2        # true head width (lat, lon)
_HEAD_PAD = 8    # padded to one sublane group (free: same vreg footprint as 2)


def _round_up(n, m):
    return ((n + m - 1) // m) * m


def _mlp_kernel(x_ref, w1_ref, b1_ref, w2_ref, b2_ref, w3t_ref, b3t_ref,
                scale_ref, o_ref):
    # Layer 1: (tb, D) @ (D, 256) -> f32 accumulation on the MXU, bias + ReLU in f32.
    h1 = jnp.dot(x_ref[...], w1_ref[...], preferred_element_type=jnp.float32)
    h1 = jnp.maximum(h1 + b1_ref[...], 0.0)
    # Layer 2: (tb, 256) @ (256, 64) -> f32 acc, bias + ReLU in f32.
    h2 = jnp.dot(h1.astype(w2_ref.dtype), w2_ref[...],
                 preferred_element_type=jnp.float32)
    h2 = jnp.maximum(h2 + b2_ref[...], 0.0)
    # Transposed head: (8, 64) . (tb, 64)^T -> (8, tb).  Rows 0/1 carry lat/lon
    # pre-activations, rows 2..7 are zero padding.  Lane dim = batch (lane-dense).
    z = jax.lax.dot_general(w3t_ref[...], h2,
                            dimension_numbers=(((1,), (1,)), ((), ())),
                            preferred_element_type=jnp.float32)
    z = jnp.tanh(z + b3t_ref[...])                 # b3t: (8, 1) broadcast over lanes
    o_ref[...] = (z * scale_ref[...]).astype(o_ref.dtype)   # scale: [[90],[180],0...]


def bounded_latlon_regressor(x, params, *, tb=2048, use_bf16=True):
    """x: (B, D). params: w1,b1,w2,b2,w3,b3 with (in, out) weight layout."""
    B, D = x.shape
    w1, b1 = params["w1"], params["b1"]   # (D, 256),  (1, 256)
    w2, b2 = params["w2"], params["b2"]   # (256, 64), (1, 64)
    w3, b3 = params["w3"], params["b3"]   # (64, 2),   (1, 2)

    b1 = b1.astype(jnp.float32).reshape(1, _H1)
    b2 = b2.astype(jnp.float32).reshape(1, _H2)

    # Transposed head operands, padded 2 -> 8 rows (sublane-native, pad rows are 0).
    w3t = jnp.zeros((_HEAD_PAD, _H2), jnp.float32)
    w3t = w3t.at[:_HEAD, :].set(jnp.transpose(w3.astype(jnp.float32)))
    b3t = jnp.zeros((_HEAD_PAD, 1), jnp.float32)
    b3t = b3t.at[:_HEAD, 0].set(b3.astype(jnp.float32).reshape(-1))
    scale = (jnp.zeros((_HEAD_PAD, 1), jnp.float32)
             .at[0, 0].set(90.0).at[1, 0].set(180.0))

    # bf16 MXU inputs by default (f32 accumulation preserved in-kernel).
    if use_bf16:
        xk = x.astype(jnp.bfloat16)
        w1k = w1.astype(jnp.bfloat16)
        w2k = w2.astype(jnp.bfloat16)
    else:
        xk = x.astype(jnp.float32)
        w1k = w1.astype(jnp.float32)
        w2k = w2.astype(jnp.float32)

    # Batch tile: big (amortize ~0.35us/step pipeline overhead), multiple of 256,
    # capped so the "parallel" grid has >= 2 steps (v7x 2-TC sharding).  The
    # ragged tail is handled by edge-block clipping; no padded copy of x.
    tb = max(256, _round_up(tb, 256))
    two_step = max(256, _round_up(pl.cdiv(B, 2), 256))
    tb_eff = min(tb, two_step)
    grid = (pl.cdiv(B, tb_eff),)

    full = lambda i: (0, 0)

    flops = 2 * B * (D * _H1 + _H1 * _H2 + _H2 * _HEAD_PAD)
    bytes_accessed = int(
        B * D * xk.dtype.itemsize
        + w1k.size * w1k.dtype.itemsize + b1.size * 4
        + w2k.size * w2k.dtype.itemsize + b2.size * 4
        + w3t.size * 4 + b3t.size * 4 + scale.size * 4
        + _HEAD_PAD * B * 4
    )
    cost = pl.CostEstimate(flops=int(flops),
                           transcendentals=int(grid[0] * tb_eff * _HEAD_PAD),
                           bytes_accessed=bytes_accessed)

    out = pl.pallas_call(
        _mlp_kernel,
        out_shape=jax.ShapeDtypeStruct((_HEAD_PAD, B), jnp.float32),
        grid_spec=pltpu.PrefetchScalarGridSpec(
            num_scalar_prefetch=0,
            grid=grid,
            in_specs=[
                # x tiled over batch; last dim = full D (no HBM-side D padding).
                pl.BlockSpec((tb_eff, D), lambda i: (i, 0)),
                # Constant index_maps -> weights/biases stay VMEM-resident.
                pl.BlockSpec(w1k.shape, full),
                pl.BlockSpec(b1.shape, full),
                pl.BlockSpec(w2k.shape, full),
                pl.BlockSpec(b2.shape, full),
                pl.BlockSpec(w3t.shape, full),
                pl.BlockSpec(b3t.shape, full),
                pl.BlockSpec(scale.shape, full),
            ],
            # Lane-dense transposed output: (8, tb) blocks over the batch lanes.
            out_specs=pl.BlockSpec((_HEAD_PAD, tb_eff), lambda i: (0, i)),
        ),
        compiler_params=pltpu.CompilerParams(
            dimension_semantics=("parallel",),
            vmem_limit_bytes=48 * 1024 * 1024,
        ),
        cost_estimate=cost,
    )(xk, w1k, b1, w2k, b2, w3t, b3t, scale)

    # (8, B) -> take the two real rows, transpose to (B, 2): [lat, lon].
    return out[:_HEAD, :].T


def init_params(key, input_dim):
    """Deterministic synthetic init (shapes mirror the torch module's Linear layers)."""
    ks = jax.random.split(key, 6)

    def lin(kw, kb, fan_in, fan_out):
        bound = 1.0 / jnp.sqrt(fan_in)
        w = jax.random.uniform(kw, (fan_in, fan_out), jnp.float32, -bound, bound)
        b = jax.random.uniform(kb, (1, fan_out), jnp.float32, -bound, bound)
        return w, b

    w1, b1 = lin(ks[0], ks[1], input_dim, _H1)
    w2, b2 = lin(ks[2], ks[3], _H1, _H2)
    w3, b3 = lin(ks[4], ks[5], _H2, _HEAD)
    return {"w1": w1, "b1": b1, "w2": w2, "b2": b2, "w3": w3, "b3": b3}


def _reference(x, p, dtype=jnp.float32):
    """Pure-JAX reference; dtype controls the precision of the x/w1/w2 MXU inputs."""
    hp = jax.lax.Precision.HIGHEST
    xc = x.astype(dtype)
    w1 = p["w1"].astype(dtype)
    w2 = p["w2"].astype(dtype)
    h1 = jnp.maximum(
        jnp.dot(xc, w1, precision=hp, preferred_element_type=jnp.float32)
        + p["b1"].astype(jnp.float32), 0.0)
    h2 = jnp.maximum(
        jnp.dot(h1.astype(dtype), w2, precision=hp,
                preferred_element_type=jnp.float32)
        + p["b2"].astype(jnp.float32), 0.0)
    z = jnp.tanh(
        jnp.dot(h2, p["w3"].astype(jnp.float32), precision=hp,
                preferred_element_type=jnp.float32)
        + p["b3"].astype(jnp.float32))
    return jnp.stack([z[:, 0] * 90.0, z[:, 1] * 180.0], axis=1)


if __name__ == "__main__":
    key = jax.random.PRNGKey(0)
    # Awkward small shapes: B not a tile multiple (2 grid steps, partial tail),
    # D not 128-aligned -- exercises edge-block clipping and the unpadded-D path.
    B, D = 300, 48
    kx, kp = jax.random.split(key)
    x = jax.random.normal(kx, (B, D), dtype=jnp.float32)
    params = init_params(kp, D)

    # f32 MXU path: tight check against the f32 HIGHEST-precision reference.
    out_f32 = jax.block_until_ready(
        bounded_latlon_regressor(x, params, use_bf16=False))
    ref_f32 = _reference(x, params, jnp.float32)
    assert out_f32.shape == (B, 2), out_f32.shape
    assert jnp.allclose(out_f32, ref_f32, atol=1e-3, rtol=1e-3), (
        float(jnp.max(jnp.abs(out_f32 - ref_f32))))

    # bf16 MXU path (default): compare against a bf16-input reference with a
    # dtype-gated tolerance (x90 / x180 output scaling amplifies quantization).
    out_bf16 = jax.block_until_ready(bounded_latlon_regressor(x, params))
    ref_bf16 = _reference(x, params, jnp.bfloat16)
    assert out_bf16.shape == (B, 2), out_bf16.shape
    assert jnp.allclose(out_bf16, ref_bf16, atol=5e-2, rtol=1e-2), (
        float(jnp.max(jnp.abs(out_bf16 - ref_bf16))))

    print("KERNEL_OK")
</pallas_src>

<mosaic_0001>
module attributes {stable_mosaic.version = 11 : i64} {
  func.func @_mlp_kernel(%arg0: i32, %arg1: memref<256x48xf32, #tpu.memory_space<vmem>>, %arg2: memref<48x256xf32, #tpu.memory_space<vmem>>, %arg3: memref<1x256xf32, #tpu.memory_space<vmem>>, %arg4: memref<256x64xf32, #tpu.memory_space<vmem>>, %arg5: memref<1x64xf32, #tpu.memory_space<vmem>>, %arg6: memref<8x64xf32, #tpu.memory_space<vmem>>, %arg7: memref<8x1xf32, #tpu.memory_space<vmem>>, %arg8: memref<8x1xf32, #tpu.memory_space<vmem>>, %arg9: memref<8x256xf32, #tpu.memory_space<vmem>>) attributes {dimension_semantics = [#tpu.dimension_semantics<parallel>], iteration_bounds = array<i64: 2>, scalar_prefetch = 0 : i64, scratch_operands = 0 : i64, tpu.core_type = #tpu.core_type<tc>, window_params = [{transform_indices = @transform_0, window_bounds = array<i64: 256, 48>}, {pipeline_mode = #tpu.pipeline_mode<synchronous>, transform_indices = @transform_1, window_bounds = array<i64: 48, 256>}, {pipeline_mode = #tpu.pipeline_mode<synchronous>, transform_indices = @transform_2, window_bounds = array<i64: 1, 256>}, {pipeline_mode = #tpu.pipeline_mode<synchronous>, transform_indices = @transform_3, window_bounds = array<i64: 256, 64>}, {pipeline_mode = #tpu.pipeline_mode<synchronous>, transform_indices = @transform_4, window_bounds = array<i64: 1, 64>}, {pipeline_mode = #tpu.pipeline_mode<synchronous>, transform_indices = @transform_5, window_bounds = array<i64: 8, 64>}, {pipeline_mode = #tpu.pipeline_mode<synchronous>, transform_indices = @transform_6, window_bounds = array<i64: 8, 1>}, {pipeline_mode = #tpu.pipeline_mode<synchronous>, transform_indices = @transform_7, window_bounds = array<i64: 8, 1>}, {transform_indices = @transform_8, window_bounds = array<i64: 8, 256>}]} {
    %c0 = arith.constant 0 : index
    %c0_0 = arith.constant 0 : index
    %0 = vector.load %arg1[%c0, %c0_0] : memref<256x48xf32, #tpu.memory_space<vmem>>, vector<256x48xf32>
    %c0_1 = arith.constant 0 : index
    %c0_2 = arith.constant 0 : index
    %1 = vector.load %arg2[%c0_1, %c0_2] : memref<48x256xf32, #tpu.memory_space<vmem>>, vector<48x256xf32>
    %cst = arith.constant dense<0.000000e+00> : vector<256x256xf32>
    %2 = tpu.matmul %0, %1, %cst {dimension_numbers = #tpu.dot_dimension_numbers<[1], [0], [0], [1], [0, 0, 1, 1], [], []>} : vector<256x48xf32>, vector<48x256xf32>, vector<256x256xf32> -> vector<256x256xf32>
    %c0_3 = arith.constant 0 : index
    %c0_4 = arith.constant 0 : index
    %3 = vector.load %arg3[%c0_3, %c0_4] : memref<1x256xf32, #tpu.memory_space<vmem>>, vector<1x256xf32>
    %4 = vector.broadcast %3 : vector<1x256xf32> to vector<256x256xf32>
    %5 = arith.addf %2, %4 : vector<256x256xf32>
    %cst_5 = arith.constant 0.000000e+00 : f32
    %6 = vector.broadcast %cst_5 : f32 to vector<256x256xf32>
    %7 = arith.maximumf %5, %6 : vector<256x256xf32>
    %c0_6 = arith.constant 0 : index
    %c0_7 = arith.constant 0 : index
    %8 = vector.load %arg4[%c0_6, %c0_7] : memref<256x64xf32, #tpu.memory_space<vmem>>, vector<256x64xf32>
    %cst_8 = arith.constant dense<0.000000e+00> : vector<256x64xf32>
    %9 = tpu.matmul %7, %8, %cst_8 {dimension_numbers = #tpu.dot_dimension_numbers<[1], [0], [0], [1], [0, 0, 1, 1], [], []>} : vector<256x256xf32>, vector<256x64xf32>, vector<256x64xf32> -> vector<256x64xf32>
    %c0_9 = arith.constant 0 : index
    %c0_10 = arith.constant 0 : index
    %10 = vector.load %arg5[%c0_9, %c0_10] : memref<1x64xf32, #tpu.memory_space<vmem>>, vector<1x64xf32>
    %11 = vector.broadcast %10 : vector<1x64xf32> to vector<256x64xf32>
    %12 = arith.addf %9, %11 : vector<256x64xf32>
    %cst_11 = arith.constant 0.000000e+00 : f32
    %13 = vector.broadcast %cst_11 : f32 to vector<256x64xf32>
    %14 = arith.maximumf %12, %13 : vector<256x64xf32>
    %c0_12 = arith.constant 0 : index
    %c0_13 = arith.constant 0 : index
    %15 = vector.load %arg6[%c0_12, %c0_13] : memref<8x64xf32, #tpu.memory_space<vmem>>, vector<8x64xf32>
    %cst_14 = arith.constant dense<0.000000e+00> : vector<8x256xf32>
    %16 = tpu.matmul %15, %14, %cst_14 {dimension_numbers = #tpu.dot_dimension_numbers<[1], [1], [0], [0], [0, 0, 1, 0], [], []>} : vector<8x64xf32>, vector<256x64xf32>, vector<8x256xf32> -> vector<8x256xf32>
    %c0_15 = arith.constant 0 : index
    %c0_16 = arith.constant 0 : index
    %17 = vector.load %arg7[%c0_15, %c0_16] : memref<8x1xf32, #tpu.memory_space<vmem>>, vector<8x1xf32>
    %18 = vector.broadcast %17 : vector<8x1xf32> to vector<8x256xf32>
    %19 = arith.addf %16, %18 : vector<8x256xf32>
    %20 = math.tanh %19 : vector<8x256xf32>
    %c0_17 = arith.constant 0 : index
    %c0_18 = arith.constant 0 : index
    %21 = vector.load %arg8[%c0_17, %c0_18] : memref<8x1xf32, #tpu.memory_space<vmem>>, vector<8x1xf32>
    %22 = vector.broadcast %21 : vector<8x1xf32> to vector<8x256xf32>
    %23 = arith.mulf %20, %22 : vector<8x256xf32>
    %c0_19 = arith.constant 0 : index
    %c0_20 = arith.constant 0 : index
    %24 = vector.load %arg9[%c0_19, %c0_20] : memref<8x256xf32, #tpu.memory_space<vmem>>, vector<8x256xf32>
    tpu.vector_store %arg9[%c0_19, %c0_20], %23 {strides = array<i32>} : memref<8x256xf32, #tpu.memory_space<vmem>>, vector<8x256xf32>,
    return
  }
  func.func @transform_0(%arg0: i32) -> (i32, i32) {
    %c0_i32 = arith.constant 0 : i32
    %c0_i32_0 = arith.constant 0 : i32
    return %arg0, %c0_i32 : i32, i32
  }
  func.func @transform_1(%arg0: i32) -> (i32, i32) {
    %c0_i32 = arith.constant 0 : i32
    %c0_i32_0 = arith.constant 0 : i32
    %c0_i32_1 = arith.constant 0 : i32
    return %c0_i32, %c0_i32_0 : i32, i32
  }
  func.func @transform_2(%arg0: i32) -> (i32, i32) {
    %c0_i32 = arith.constant 0 : i32
    %c0_i32_0 = arith.constant 0 : i32
    %c0_i32_1 = arith.constant 0 : i32
    return %c0_i32, %c0_i32_0 : i32, i32
  }
  func.func @transform_3(%arg0: i32) -> (i32, i32) {
    %c0_i32 = arith.constant 0 : i32
    %c0_i32_0 = arith.constant 0 : i32
    %c0_i32_1 = arith.constant 0 : i32
    return %c0_i32, %c0_i32_0 : i32, i32
  }
  func.func @transform_4(%arg0: i32) -> (i32, i32) {
    %c0_i32 = arith.constant 0 : i32
    %c0_i32_0 = arith.constant 0 : i32
    %c0_i32_1 = arith.constant 0 : i32
    return %c0_i32, %c0_i32_0 : i32, i32
  }
  func.func @transform_5(%arg0: i32) -> (i32, i32) {
    %c0_i32 = arith.constant 0 : i32
    %c0_i32_0 = arith.constant 0 : i32
    %c0_i32_1 = arith.constant 0 : i32
    return %c0_i32, %c0_i32_0 : i32, i32
  }
  func.func @transform_6(%arg0: i32) -> (i32, i32) {
    %c0_i32 = arith.constant 0 : i32
    %c0_i32_0 = arith.constant 0 : i32
    %c0_i32_1 = arith.constant 0 : i32
    return %c0_i32, %c0_i32_0 : i32, i32
  }
  func.func @transform_7(%arg0: i32) -> (i32, i32) {
    %c0_i32 = arith.constant 0 : i32
    %c0_i32_0 = arith.constant 0 : i32
    %c0_i32_1 = arith.constant 0 : i32
    return %c0_i32, %c0_i32_0 : i32, i32
  }
  func.func @transform_8(%arg0: i32) -> (i32, i32) {
    %c0_i32 = arith.constant 0 : i32
    %c0_i32_0 = arith.constant 0 : i32
    return %c0_i32, %arg0 : i32, i32
  }
}

</mosaic_0001>

<bundles_post_ra>
// kernel: tpu_custom_call.1
= control target key start
LH: loop header
LB: loop body
LE: loop exit
PB: predicated region body
PF: predicated region fallthrough
CT: control target
= control target key end

     0   :  { %13 = vsyncpa [#allocation3], 0  ;;  %s2293_s0 = inlined_call_operand.vmem [shape: f32[300,48], index: 0, kind: input, shape index: {}]   ;;  %s2294_s1 = inlined_call_operand.vmem [shape: f32[48,256], index: 1, kind: input, shape index: {}]   ;;  %s2295_s2 = inlined_call_operand.vmem [shape: f32[1,256], index: 2, kind: input, shape index: {}]   ;;  %s2296_s3 = inlined_call_operand.vmem [shape: f32[256,64], index: 3, kind: input, shape index: {}]   ;;  %s2297_s4 = inlined_call_operand.vmem [shape: f32[1,64], index: 4, kind: input, shape index: {}]   ;;  %s2298_s5 = inlined_call_operand.vmem [shape: f32[8,64], index: 5, kind: input, shape index: {}]   ;;  %s2299_s6 = inlined_call_operand.vmem [shape: f32[8,1], index: 6, kind: input, shape index: {}]   ;;  %s2300_s7 = inlined_call_operand.vmem [shape: f32[8,1], index: 7, kind: input, shape index: {}]   ;;  %s2301_s8 = inlined_call_operand.hbm [shape: f32[8,300], index: 8, kind: output, shape index: {}]  }
   0x1   :  { %15 = vsyncpa [#allocation3 + $0x1], 0  ;;  %s1755_s27 = smov 0   ;;  %s1757_s28 = smov 0  }
   0x2   :  { %s1759_s29 = smov 0   ;;  %s1761_s30 = smov 0  }
   0x3 LB: > { %s1776_s9 = sadd.s32 4294967295, %s1704_s30   ;;  %s1371_s10 = sadd.s32 4294967294, %s1704_s30   ;;  %s1704_s30 = sphi %s1761_s30, %s2309_s30   ;;  %s1700_s29 = sphi %s1759_s29, %s2308_s29   ;;  %s1696_s28 = sphi %s1757_s28, %s2307_s28   ;;  %s1692_s27 = sphi %s1755_s27, %s2306_s27  }
   0x4   : > { %s1780_s11 = sadd.s32 1, %s1704_s30   ;;  %s201_s12 = sadd.s32 1, %s1700_s29 }
   0x5   : > { %s198_s13 = ssub.s32 %s1704_s30, %s1780_s11  ;;  %p211_p0 = scmp.ne.s32.totalorder %s1700_s29, %s1696_s28 }
   0x6   : > { %p199_p1 = scmp.eq.s32.totalorder %s198_s13, 0  ;;  %p212_p2 = scmp.eq.s32.totalorder %s1776_s9, 1 }
   0x7   : > { %p217_p3 = scmp.ne.s32.totalorder %s1696_s28, %s1692_s27  ;;  %p218_p4 = scmp.eq.s32.totalorder %s1371_s10, 1 }
   0x8   : > { %s1791_s14 = scalar_select %p199_p1, %s1700_s29, %s201_s12  }
   0x9   : > { %p1793_p5 = por %p212_p2, %p211_p0  ;;  %p1797_p6 = por %p218_p4, %p217_p3 }
   0xa   : > { %p1374_p7 = scmp.ge.s32.totalorder %s1704_s30, 1  ;;  %p274_p8 = scmp.lt.s32.totalorder %s1704_s30, 3 }
   0xc   : > { %p275_p9 = pnand %p1374_p7, %p274_p8 }
   0xd   : > { %v364_v0 = vld [vmem:[%s2294_s1 + $0x8] sm:$0xff] (!%p275_p9)  ;;  %v366_v1 = vld [vmem:[%s2294_s1 + $0x18] sm:$0xff] (!%p275_p9)  ;;  %v363_v2 = vld [vmem:[%s2294_s1] sm:$0xff] (!%p275_p9)  ;;  %s1376_s23 = sshll.u32 (!%p275_p9), %s1776_s9, 5  ;;  %v1706_v7 = vmov (!%p275_p9), 0.0   ;;  %vm387_vm0 = vcmask (!%p275_p9), 392192  }
   0xe   : > { %278 = sbr.rel (%p275_p9) target bundleno = 852 (0x354), region = 52  ;;  %v1488_v3 = vpack.c.bf16 (!%p275_p9), %v366_v1, %v364_v0  ;;  %v365_v4 = vld [vmem:[%s2294_s1 + $0x10] sm:$0xff] (!%p275_p9)  ;;  %v368_v5 = vld [vmem:[%s2294_s1 + $0x28] sm:$0xff] (!%p275_p9)  ;;  %v370_v6 = vld [vmem:[%s2294_s1 + $0x38] sm:$0xff] (!%p275_p9)  ;;  %548 = vmatprep.mubr.f32.mxu0 (!%p275_p9), %v1706_v7  ;;  %p317_p10 = scmp.lt.s32.totalorder (!%p275_p9), %s1376_s23, 37  ;;  %v1707_v20 = vmov (!%p275_p9), 0.0|0.0  }
   0xf   : > { %v1490_v8 = vpack.c.bf16 (!%p275_p9), %v365_v4, %v363_v2  ;;  %v1492_v9 = vpack.c.bf16 (!%p275_p9), %v370_v6, %v368_v5  ;;  %v367_v10 = vld [vmem:[%s2294_s1 + $0x20] sm:$0xff] (!%p275_p9)  ;;  %v369_v11 = vld [vmem:[%s2294_s1 + $0x30] sm:$0xff] (!%p275_p9)  ;;  %v372_v12 = vld [vmem:[%s2294_s1 + $0x48] sm:$0xff] (!%p275_p9)  ;;  %1500 = vmatprep.subr.bf16.mxu1 (!%p275_p9), %v1707_v20  ;;  %vm1108_vm1 = vcmask (!%p275_p9), 523264   ;;  %s309_s21 = sand.u32 (!%p275_p9), 1, %s1696_s28  }
  0x10   : > { %1489 = vmatprep.subr.bf16.mxu0 (!%p275_p9), %v1488_v3  ;;  %v374_v13 = vld [vmem:[%s2294_s1 + $0x58] sm:$0xff] (!%p275_p9)  ;;  %v1494_v14 = vpack.c.bf16 (!%p275_p9), %v369_v11, %v367_v10  ;;  %v371_v16 = vld [vmem:[%s2294_s1 + $0x40] sm:$0xff] (!%p275_p9)  ;;  %v373_v17 = vld [vmem:[%s2294_s1 + $0x50] sm:$0xff] (!%p275_p9)  ;;  %s1375_s22 = sshll.u32 (!%p275_p9), %s309_s21, 4  ;;  %s2239_s25 = scalar_lea.sflag (!%p275_p9), [#allocation3], %s309_s21 }
  0x11   : > { %1491 = vmatpush1.bf16.msra.mxu0 (!%p275_p9), %v1490_v8  ;;  %v1496_v15 = vpack.c.bf16 (!%p275_p9), %v374_v13, %v372_v12  ;;  %v1498_v18 = vpack.c.bf16 (!%p275_p9), %v373_v17, %v371_v16  ;;  %v805_v22 = vld [vmem:[%s2296_s3] sm:$0xff] (!%p275_p9)  ;;  %v806_v23 = vld [vmem:[%s2296_s3 + $0x8] sm:$0xff] (!%p275_p9)  ;;  %v807_v24 = vld [vmem:[%s2296_s3 + $0x10] sm:$0xff] (!%p275_p9)  ;;  %s311_s24 = scalar_lea.vmem (!%p275_p9), [#allocation2], %s1375_s22 }
  0x12   : > { %1493 = vmatprep.subr.bf16.mxu0 (!%p275_p9), %v1492_v9  ;;  %v808_v25 = vld [vmem:[%s2296_s3 + $0x18] sm:$0xff] (!%p275_p9)  ;;  %v1501_v26 = vpack.c.bf16 (!%p275_p9), %v806_v23, %v805_v22  ;;  %v809_v29 = vld [vmem:[%s2296_s3 + $0x20] sm:$0xff] (!%p275_p9)  ;;  %v810_v30 = vld [vmem:[%s2296_s3 + $0x28] sm:$0xff] (!%p275_p9) }
  0x13   : > { %v1504_v28 = vpack.c.bf16 (!%p275_p9), %v808_v25, %v807_v24  ;;  %v1507_v32 = vpack.c.bf16 (!%p275_p9), %v810_v30, %v809_v29  ;;  %v811_v33 = vld [vmem:[%s2296_s3 + $0x30] sm:$0xff] (!%p275_p9)  ;;  %v812_v34 = vld [vmem:[%s2296_s3 + $0x38] sm:$0xff] (!%p275_p9)  ;;  %v813_v37 = vld [vmem:[%s2296_s3 + $0x40] sm:$0xff] (!%p275_p9) }
  0x14   : > { %1502 = vmatpush1.bf16.msra.mxu1 (!%p275_p9), %v1501_v26  ;;  %v1510_v36 = vpack.c.bf16 (!%p275_p9), %v812_v34, %v811_v33  ;;  %v814_v38 = vld [vmem:[%s2296_s3 + $0x48] sm:$0xff] (!%p275_p9)  ;;  %v815_v41 = vld [vmem:[%s2296_s3 + $0x50] sm:$0xff] (!%p275_p9)  ;;  %v816_v42 = vld [vmem:[%s2296_s3 + $0x58] sm:$0xff] (!%p275_p9) }
  0x15   : > { %s2311_s23 = smov (!%p317_p10, %s1376_s23), 37  ;;  %1495 = vmatpush1.bf16.msra.mxu0 %v1494_v14  ;;  %1503 = vmatprep.subr.bf16.mxu1 %v1707_v20  ;;  %v1513_v40 = vpack.c.bf16 %v814_v38, %v813_v37  ;;  %v1516_v44 = vpack.c.bf16 %v816_v42, %v815_v41  ;;  %v817_v45 = vld [vmem:[%s2296_s3 + $0x60] sm:$0xff]  ;;  %v818_v46 = vld [vmem:[%s2296_s3 + $0x68] sm:$0xff]  ;;  %v819_v49 = vld [vmem:[%s2296_s3 + $0x70] sm:$0xff]  ;;  %v377_v37 = vlaneseq  ;;  %s1445_s26 = sshll.u32 (%p1793_p5), %s1776_s9, 1 }
  0x16   : > { %s1377_s17 = sshll.u32 %s2311_s23, 3  ;;  %1497 = vmatprep.subr.bf16.mxu0 %v1496_v15  ;;  %v1519_v48 = vpack.c.bf16 %v818_v46, %v817_v45  ;;  %v820_v50 = vld [vmem:[%s2296_s3 + $0x78] sm:$0xff]  ;;  %v821_v53 = vld [vmem:[%s2296_s3 + $0x80] sm:$0xff]  ;;  %v822_v54 = vld [vmem:[%s2296_s3 + $0x88] sm:$0xff] }
  0x17   : > { %s1844_s20 = scalar_lea.vmem %s2293_s0, %s1377_s17  ;;  %v1522_v52 = vpack.c.bf16 %v820_v50, %v819_v49  ;;  %v1525_v56 = vpack.c.bf16 %v822_v54, %v821_v53  ;;  %v823_v57 = vld [vmem:[%s2296_s3 + $0x90] sm:$0xff]  ;;  %v824_v58 = vld [vmem:[%s2296_s3 + $0x98] sm:$0xff]  ;;  %v825_v61 = vld [vmem:[%s2296_s3 + $0xa0] sm:$0xff]  ;;  %v378_v38 = vshrl.u32 %v377_v37, 7 }
  0x18   : > { %v331_v19 = vld [vmem:[%s1844_s20] sm:$0xff]  ;;  %v332_v21 = vld [vmem:[%s1844_s20 + $0x8] sm:$0xff]  ;;  %v333_v27 = vld [vmem:[%s1844_s20 + $0x10] sm:$0xff]  ;;  %1505 = vmatpush1.bf16.msra.mxu1 %v1504_v28  ;;  %v1528_v60 = vpack.c.bf16 %v824_v58, %v823_v57 }
  0x19   : > { %1499 = vmatpush1.bf16.msra.mxu0 %v1498_v18  ;;  %v334_v31 = vld [vmem:[%s1844_s20 + $0x18] sm:$0xff]  ;;  %1506 = vmatprep.subr.bf16.mxu1 %v1707_v20  ;;  %v335_v35 = vld [vmem:[%s1844_s20 + $0x20] sm:$0xff]  ;;  %v336_v39 = vld [vmem:[%s1844_s20 + $0x28] sm:$0xff]  ;;  %v383_v41 = vsub.s32 1, %v378_v38 }
  0x1a   : > { %v337_v43 = vld [vmem:[%s1844_s20 + $0x30] sm:$0xff]  ;;  %v338_v47 = vld [vmem:[%s1844_s20 + $0x38] sm:$0xff]  ;;  %v339_v51 = vld [vmem:[%s1844_s20 + $0x40] sm:$0xff] }
  0x1b   : > { %v340_v55 = vld [vmem:[%s1844_s20 + $0x48] sm:$0xff]  ;;  %v341_v59 = vld [vmem:[%s1844_s20 + $0x50] sm:$0xff]  ;;  %v342_v63 = vld [vmem:[%s1844_s20 + $0x58] sm:$0xff] }
  0x1c   : > { %1378 = vmatmul.mubr.msk.f32.vlgmr.msra.gmra.mrb[0].mxu0 %vm387_vm0, %v331_v19  ;;  %1508 = vmatpush1.bf16.msra.mxu1 %v1507_v32  ;;  %v826_v62 = vld [vmem:[%s2296_s3 + $0xa8] sm:$0xff]  ;;  %v827_v1 = vld [vmem:[%s2296_s3 + $0xb0] sm:$0xff]  ;;  %v828_v2 = vld [vmem:[%s2296_s3 + $0xb8] sm:$0xff] }
  0x1d   : > { %554 = vmatprep.mubr.f32.mxu0 %v1706_v7  ;;  %1509 = vmatprep.subr.bf16.mxu1 %v1707_v20  ;;  %v1531_v0 = vpack.c.bf16 %v826_v62, %v825_v61  ;;  %v343_v3 = vld [vmem:[%s1844_s20 + $0x60] sm:$0xff]  ;;  %v1534_v4 = vpack.c.bf16 %v828_v2, %v827_v1  ;;  %v830_v6 = vld [vmem:[%s2296_s3 + $0xc8] sm:$0xff]  ;;  %v831_v10 = vld [vmem:[%s2296_s3 + $0xd0] sm:$0xff] }
  0x1e   : > { %v829_v5 = vld [vmem:[%s2296_s3 + $0xc0] sm:$0xff]  ;;  %v344_v8 = vld [vmem:[%s1844_s20 + $0x68] sm:$0xff]  ;;  %v832_v11 = vld [vmem:[%s2296_s3 + $0xd8] sm:$0xff] }
  0x1f   : > { %v1537_v9 = vpack.c.bf16 %v830_v6, %v829_v5  ;;  %v345_v12 = vld [vmem:[%s1844_s20 + $0x70] sm:$0xff]  ;;  %v1540_v13 = vpack.c.bf16 %v832_v11, %v831_v10  ;;  %v346_v14 = vld [vmem:[%s1844_s20 + $0x78] sm:$0xff]  ;;  %v347_v15 = vld [vmem:[%s1844_s20 + $0x80] sm:$0xff] }
  0x20   : > { %1379 = vmatmul.mubr.msk.f32.gmra.mrb[2].mxu0 %vm387_vm0, %v332_v21  ;;  %1511 = vmatpush1.bf16.msra.mxu1 %v1510_v36  ;;  %v348_v16 = vld [vmem:[%s1844_s20 + $0x88] sm:$0xff]  ;;  %v349_v17 = vld [vmem:[%s1844_s20 + $0x90] sm:$0xff]  ;;  %v350_v18 = vld [vmem:[%s1844_s20 + $0x98] sm:$0xff] }
  0x21   : > { %560 = vmatprep.mubr.f32.mxu0 %v1706_v7  ;;  %1512 = vmatprep.subr.bf16.mxu1 %v1707_v20  ;;  %v351_v19 = vld [vmem:[%s1844_s20 + $0xa0] sm:$0xff]  ;;  %v834_v22 = vld [vmem:[%s2296_s3 + $0xe8] sm:$0xff]  ;;  %v835_v25 = vld [vmem:[%s2296_s3 + $0xf0] sm:$0xff] }
  0x22   : > { %v833_v21 = vld [vmem:[%s2296_s3 + $0xe0] sm:$0xff]  ;;  %v352_v23 = vld [vmem:[%s1844_s20 + $0xa8] sm:$0xff]  ;;  %v836_v26 = vld [vmem:[%s2296_s3 + $0xf8] sm:$0xff] }
  0x23   : > { %v1543_v24 = vpack.c.bf16 %v834_v22, %v833_v21  ;;  %v1546_v28 = vpack.c.bf16 %v836_v26, %v835_v25  ;;  %v355_v29 = vld [vmem:[%s1844_s20 + $0xc0] sm:$0xff]  ;;  %v356_v30 = vld [vmem:[%s1844_s20 + $0xc8] sm:$0xff]  ;;  %v358_v32 = vld [vmem:[%s1844_s20 + $0xd8] sm:$0xff] }
  0x24   : > { %1380 = vmatmul.mubr.msk.f32.gmra.mrb[4].mxu0 %vm387_vm0, %v333_v27  ;;  %1514 = vmatpush1.bf16.msra.mxu1 %v1513_v40  ;;  %v353_v27 = vld [vmem:[%s1844_s20 + $0xb0] sm:$0xff]  ;;  %v359_v33 = vld [vmem:[%s1844_s20 + $0xe0] sm:$0xff]  ;;  %v360_v34 = vld [vmem:[%s1844_s20 + $0xe8] sm:$0xff] }
  0x25   : > { %566 = vmatprep.mubr.f32.mxu0 %v1706_v7  ;;  %1515 = vmatprep.subr.bf16.mxu1 %v1707_v20  ;;  %v362_v36 = vld [vmem:[%s1844_s20 + $0xf8] sm:$0xff]  ;;  %v375_v40 = vld [vmem:[%s2295_s2] sm:$0x3]  ;;  %vm2178_vm2 = vmpackc.low %vm1108_vm1, %vm1108_vm1 }
  0x28   : > { %1381 = vmatmul.mubr.msk.f32.gmra.mrb[6].mxu0 %vm387_vm0, %v334_v31  ;;  %1517 = vmatpush1.bf16.msra.mxu1 %v1516_v44  ;;  %v357_v31 = vld [vmem:[%s1844_s20 + $0xd0] sm:$0xff] }
  0x29   : > { %572 = vmatprep.mubr.f32.mxu0 %v1706_v7  ;;  %1518 = vmatprep.subr.bf16.mxu1 %v1707_v20 }
  0x2c   : > { %1382 = vmatmul.mubr.msk.f32.gmra.mrb[8].mxu0 %vm387_vm0, %v335_v35  ;;  %1520 = vmatpush1.bf16.msra.mxu1 %v1519_v48  ;;  %v361_v35 = vld [vmem:[%s1844_s20 + $0xf0] sm:$0xff] }
  0x2d   : > { %578 = vmatprep.mubr.f32.mxu0 %v1706_v7  ;;  %1521 = vmatprep.subr.bf16.mxu1 %v1707_v20 }
  0x30   : > { %1383 = vmatmul.mubr.msk.f32.gmra.mrb[10].mxu0 %vm387_vm0, %v336_v39  ;;  %1523 = vmatpush1.bf16.msra.mxu1 %v1522_v52  ;;  %v379_v39 = vsub.s32 0, %v378_v38 }
  0x31   : > { %584 = vmatprep.mubr.f32.mxu0 %v1706_v7  ;;  %1524 = vmatprep.subr.bf16.mxu1 %v1707_v20 }
  0x32   : > { %v2056_v42 = vrot.slane %v375_v40, %v379_v39 }
  0x34   : > { %1384 = vmatmul.mubr.msk.f32.gmra.mrb[12].mxu0 %vm387_vm0, %v337_v43  ;;  %1526 = vmatpush1.bf16.msra.mxu1 %v1525_v56  ;;  %v2058_v43 = vrot.slane %v375_v40, %v383_v41 }
  0x35   : > { %590 = vmatprep.mubr.f32.mxu0 %v1706_v7  ;;  %1527 = vmatprep.subr.bf16.mxu1 %v1707_v20 }
  0x38   : > { %1385 = vmatmul.mubr.msk.f32.gmra.mrb[14].mxu0 %vm387_vm0, %v338_v47  ;;  %1529 = vmatpush1.bf16.msra.mxu1 %v1528_v60 }
  0x39   : > { %596 = vmatprep.mubr.f32.mxu0 %v1706_v7  ;;  %1530 = vmatprep.subr.bf16.mxu1 %v1707_v20 }
  0x3c   : > { %1386 = vmatmul.mubr.msk.f32.gmra.mrb[16].mxu0 %vm387_vm0, %v339_v51  ;;  %1532 = vmatpush1.bf16.msra.mxu1 %v1531_v0 }
  0x3d   : > { %602 = vmatprep.mubr.f32.mxu0 %v1706_v7  ;;  %1533 = vmatprep.subr.bf16.mxu1 %v1707_v20 }
  0x40   : > { %1387 = vmatmul.mubr.msk.f32.gmra.mrb[18].mxu0 %vm387_vm0, %v340_v55  ;;  %1535 = vmatpush1.bf16.msra.mxu1 %v1534_v4 }
  0x41   : > { %608 = vmatprep.mubr.f32.mxu0 %v1706_v7  ;;  %1536 = vmatprep.subr.bf16.mxu1 %v1707_v20 }
  0x44   : > { %1388 = vmatmul.mubr.msk.f32.gmra.mrb[20].mxu0 %vm387_vm0, %v341_v59  ;;  %1538 = vmatpush1.bf16.msra.mxu1 %v1537_v9 }
  0x45   : > { %614 = vmatprep.mubr.f32.mxu0 %v1706_v7  ;;  %1539 = vmatprep.subr.bf16.mxu1 %v1707_v20 }
  0x48   : > { %1389 = vmatmul.mubr.msk.f32.gmra.mrb[22].mxu0 %vm387_vm0, %v342_v63  ;;  %1541 = vmatpush1.bf16.msra.mxu1 %v1540_v13 }
  0x49   : > { %620 = vmatprep.mubr.f32.mxu0 %v1706_v7  ;;  %1542 = vmatprep.subr.bf16.mxu1 %v1707_v20 }
  0x4c   : > { %1390 = vmatmul.mubr.msk.f32.gmra.mrb[24].mxu0 %vm387_vm0, %v343_v3  ;;  %1544 = vmatpush1.bf16.msra.mxu1 %v1543_v24 }
  0x4d   : > { %626 = vmatprep.mubr.f32.mxu0 %v1706_v7  ;;  %1545 = vmatprep.subr.bf16.mxu1 %v1707_v20  ;;  %v354_v20 = vld [vmem:[%s1844_s20 + $0xb8] sm:$0xff]  ;;  %s1300_s20 = ssub.s32 (%p1793_p5), 3, %s1445_s26 }
  0x4e   : > { %p1301_p11 = scmp.lt.s32.totalorder (%p1793_p5), %s1300_s20, 2 }
  0x50   : > { %1391 = vmatmul.mubr.msk.f32.gmra.mrb[26].mxu0 %vm387_vm0, %v344_v8  ;;  %1547 = vmatpush1.bf16.msra.mxu1 %v1546_v28 }
  0x51   : > { %632 = vmatprep.mubr.f32.mxu0 %v1706_v7 }
  0x54   : > { %1392 = vmatmul.mubr.msk.f32.gmra.mrb[28].mxu0 %vm387_vm0, %v345_v12 }
  0x55   : > { %638 = vmatprep.mubr.f32.mxu0 %v1706_v7 }
  0x58   : > { %1393 = vmatmul.mubr.msk.f32.gmra.mrb[30].mxu0 %vm387_vm0, %v346_v14 }
  0x59   : > { %644 = vmatprep.mubr.f32.mxu0 %v1706_v7 }
  0x5c   : > { %1394 = vmatmul.mubr.msk.f32.gmra.mrb[32].mxu0 %vm387_vm0, %v347_v15 }
  0x5d   : > { %650 = vmatprep.mubr.f32.mxu0 %v1706_v7 }
  0x60   : > { %1395 = vmatmul.mubr.msk.f32.gmra.mrb[34].mxu0 %vm387_vm0, %v348_v16 }
  0x61   : > { %656 = vmatprep.mubr.f32.mxu0 %v1706_v7 }
  0x64   : > { %1396 = vmatmul.mubr.msk.f32.gmra.mrb[36].mxu0 %vm387_vm0, %v349_v17 }
  0x65   : > { %662 = vmatprep.mubr.f32.mxu0 %v1706_v7 }
  0x68   : > { %1397 = vmatmul.mubr.msk.f32.gmra.mrb[38].mxu0 %vm387_vm0, %v350_v18 }
  0x69   : > { %668 = vmatprep.mubr.f32.mxu0 %v1706_v7 }
  0x6c   : > { %1398 = vmatmul.mubr.msk.f32.gmra.mrb[40].mxu0 %vm387_vm0, %v351_v19 }
  0x6d   : > { %674 = vmatprep.mubr.f32.mxu0 %v1706_v7 }
  0x70   : > { %1399 = vmatmul.mubr.msk.f32.gmra.mrb[42].mxu0 %vm387_vm0, %v352_v23 }
  0x71   : > { %680 = vmatprep.mubr.f32.mxu0 %v1706_v7 }
  0x74   : > { %1400 = vmatmul.mubr.msk.f32.gmra.mrb[44].mxu0 %vm387_vm0, %v353_v27 }
  0x75   : > { %686 = vmatprep.mubr.f32.mxu0 %v1706_v7 }
  0x78   : > { %1401 = vmatmul.mubr.msk.f32.gmra.mrb[46].mxu0 %vm387_vm0, %v354_v20 }
  0x79   : > { %692 = vmatprep.mubr.f32.mxu0 %v1706_v7 }
  0x7c   : > { %1402 = vmatmul.mubr.msk.f32.gmra.mrb[48].mxu0 %vm387_vm0, %v355_v29 }
  0x7d   : > { %698 = vmatprep.mubr.f32.mxu0 %v1706_v7 }
  0x80   : > { %1403 = vmatmul.mubr.msk.f32.gmra.mrb[50].mxu0 %vm387_vm0, %v356_v30 }
  0x81   : > { %704 = vmatprep.mubr.f32.mxu0 %v1706_v7 }
  0x84   : > { %1404 = vmatmul.mubr.msk.f32.gmra.mrb[52].mxu0 %vm387_vm0, %v357_v31 }
  0x85   : > { %710 = vmatprep.mubr.f32.mxu0 %v1706_v7 }
  0x88   : > { %1405 = vmatmul.mubr.msk.f32.gmra.mrb[54].mxu0 %vm387_vm0, %v358_v32 }
  0x89   : > { %716 = vmatprep.mubr.f32.mxu0 %v1706_v7 }
  0x8c   : > { %1406 = vmatmul.mubr.msk.f32.gmra.mrb[56].mxu0 %vm387_vm0, %v359_v33 }
  0x8d   : > { %722 = vmatprep.mubr.f32.mxu0 %v1706_v7 }
  0x90   : > { %1407 = vmatmul.mubr.msk.f32.gmra.mrb[58].mxu0 %vm387_vm0, %v360_v34 }
  0x91   : > { %728 = vmatprep.mubr.f32.mxu0 %v1706_v7 }
  0x94   : > { %1408 = vmatmul.mubr.msk.f32.gmra.mrb[60].mxu0 %vm387_vm0, %v361_v35 }
  0x95   : > { %734 = vmatprep.mubr.f32.mxu0 %v1706_v7 }
  0x98   : > { %1409 = vmatmul.mubr.msk.f32.gmra.mrb[62].mxu0 %vm387_vm0, %v362_v36 }
  0xef   : > { %v550_v44 = vpop.f32.mrb[0].mxu0 }
  0xf0   : > { %v551_v45 = vadd.f32 %v550_v44, %v2056_v42  ;;  %v552_v46 = vpop.f32.mrb[1].mxu0 }
  0xf1   : > { %v553_v7 = vadd.f32 %v552_v46, %v2058_v43 }
  0xf2   : > { %v741_v49 = vmax.f32 %v551_v45, 0.0 }
  0xf3   : > { %v556_v47 = vpop.f32.mrb[2].mxu0  ;;  %v742_v48 = vmax.f32 %v553_v7, 0.0 }
  0xf4   : > { %v557_v50 = vadd.f32 %v556_v47, %v2056_v42  ;;  %v558_v51 = vpop.f32.mrb[3].mxu0 }
  0xf5   : > { %v559_v52 = vadd.f32 %v558_v51, %v2058_v43  ;;  %908 = vmatprep.mubr.f32.mxu1 %v742_v48 }
  0xf6   : > { %909 = vmatmul.mubr.f32.vlgmr.msra.gmra.mrb[0].mxu1 %v741_v49  ;;  %v743_v55 = vmax.f32 %v557_v50, 0.0 }
  0xf7   : > { %v744_v53 = vmax.f32 %v559_v52, 0.0  ;;  %v562_v54 = vpop.f32.mrb[4].mxu0 }
  0xf8   : > { %v563_v56 = vadd.f32 %v562_v54, %v2056_v42  ;;  %v564_v57 = vpop.f32.mrb[5].mxu0 }
  0xf9   : > { %v565_v58 = vadd.f32 %v564_v57, %v2058_v43  ;;  %913 = vmatprep.mubr.f32.mxu1 %v744_v53 }
  0xfa   : > { %914 = vmatmul.mubr.f32.gmra.mrb[2].mxu1 %v743_v55  ;;  %v745_v61 = vmax.f32 %v563_v56, 0.0 }
  0xfb   : > { %v746_v59 = vmax.f32 %v565_v58, 0.0  ;;  %v568_v60 = vpop.f32.mrb[6].mxu0 }
  0xfc   : > { %v569_v62 = vadd.f32 %v568_v60, %v2056_v42  ;;  %v570_v63 = vpop.f32.mrb[7].mxu0 }
  0xfd   : > { %v571_v0 = vadd.f32 %v570_v63, %v2058_v43  ;;  %918 = vmatprep.mubr.f32.mxu1 %v746_v59 }
  0xfe   : > { %919 = vmatmul.mubr.f32.gmra.mrb[4].mxu1 %v745_v61  ;;  %v747_v3 = vmax.f32 %v569_v62, 0.0 }
  0xff   : > { %v748_v1 = vmax.f32 %v571_v0, 0.0  ;;  %v574_v2 = vpop.f32.mrb[8].mxu0 }
 0x100   : > { %v575_v4 = vadd.f32 %v574_v2, %v2056_v42  ;;  %v576_v5 = vpop.f32.mrb[9].mxu0 }
 0x101   : > { %v577_v6 = vadd.f32 %v576_v5, %v2058_v43  ;;  %923 = vmatprep.mubr.f32.mxu1 %v748_v1 }
 0x102   : > { %924 = vmatmul.mubr.f32.gmra.mrb[6].mxu1 %v747_v3  ;;  %v749_v10 = vmax.f32 %v575_v4, 0.0 }
 0x103   : > { %v750_v8 = vmax.f32 %v577_v6, 0.0  ;;  %v580_v9 = vpop.f32.mrb[10].mxu0 }
 0x104   : > { %v581_v11 = vadd.f32 %v580_v9, %v2056_v42  ;;  %v582_v12 = vpop.f32.mrb[11].mxu0 }
 0x105   : > { %v583_v13 = vadd.f32 %v582_v12, %v2058_v43  ;;  %928 = vmatprep.mubr.f32.mxu1 %v750_v8 }
 0x106   : > { %929 = vmatmul.mubr.f32.gmra.mrb[8].mxu1 %v749_v10  ;;  %v751_v16 = vmax.f32 %v581_v11, 0.0 }
 0x107   : > { %v752_v14 = vmax.f32 %v583_v13, 0.0  ;;  %v586_v15 = vpop.f32.mrb[12].mxu0 }
 0x108   : > { %v587_v17 = vadd.f32 %v586_v15, %v2056_v42  ;;  %v588_v18 = vpop.f32.mrb[13].mxu0 }
 0x109   : > { %v589_v19 = vadd.f32 %v588_v18, %v2058_v43  ;;  %933 = vmatprep.mubr.f32.mxu1 %v752_v14 }
 0x10a   : > { %934 = vmatmul.mubr.f32.gmra.mrb[10].mxu1 %v751_v16  ;;  %v753_v23 = vmax.f32 %v587_v17, 0.0 }
 0x10b   : > { %v754_v21 = vmax.f32 %v589_v19, 0.0  ;;  %v592_v22 = vpop.f32.mrb[14].mxu0 }
 0x10c   : > { %v593_v24 = vadd.f32 %v592_v22, %v2056_v42  ;;  %v594_v25 = vpop.f32.mrb[15].mxu0 }
 0x10d   : > { %v595_v26 = vadd.f32 %v594_v25, %v2058_v43  ;;  %938 = vmatprep.mubr.f32.mxu1 %v754_v21 }
 0x10e   : > { %939 = vmatmul.mubr.f32.gmra.mrb[12].mxu1 %v753_v23  ;;  %v755_v20 = vmax.f32 %v593_v24, 0.0 }
 0x10f   : > { %v756_v27 = vmax.f32 %v595_v26, 0.0  ;;  %v598_v28 = vpop.f32.mrb[16].mxu0 }
 0x110   : > { %v599_v29 = vadd.f32 %v598_v28, %v2056_v42  ;;  %v600_v30 = vpop.f32.mrb[17].mxu0 }
 0x111   : > { %v601_v31 = vadd.f32 %v600_v30, %v2058_v43  ;;  %943 = vmatprep.mubr.f32.mxu1 %v756_v27 }
 0x112   : > { %944 = vmatmul.mubr.f32.gmra.mrb[14].mxu1 %v755_v20  ;;  %v757_v34 = vmax.f32 %v599_v29, 0.0 }
 0x113   : > { %v758_v32 = vmax.f32 %v601_v31, 0.0  ;;  %v604_v33 = vpop.f32.mrb[18].mxu0 }
 0x114   : > { %v605_v35 = vadd.f32 %v604_v33, %v2056_v42  ;;  %v606_v36 = vpop.f32.mrb[19].mxu0 }
 0x115   : > { %v607_v37 = vadd.f32 %v606_v36, %v2058_v43  ;;  %948 = vmatprep.mubr.f32.mxu1 %v758_v32 }
 0x116   : > { %949 = vmatmul.mubr.f32.gmra.mrb[16].mxu1 %v757_v34  ;;  %v759_v40 = vmax.f32 %v605_v35, 0.0 }
 0x117   : > { %v760_v38 = vmax.f32 %v607_v37, 0.0  ;;  %v610_v39 = vpop.f32.mrb[20].mxu0 }
 0x118   : > { %v611_v41 = vadd.f32 %v610_v39, %v2056_v42  ;;  %v612_v44 = vpop.f32.mrb[21].mxu0 }
 0x119   : > { %v613_v45 = vadd.f32 %v612_v44, %v2058_v43  ;;  %953 = vmatprep.mubr.f32.mxu1 %v760_v38 }
 0x11a   : > { %954 = vmatmul.mubr.f32.gmra.mrb[18].mxu1 %v759_v40  ;;  %v761_v47 = vmax.f32 %v611_v41, 0.0 }
 0x11b   : > { %v762_v46 = vmax.f32 %v613_v45, 0.0  ;;  %v616_v7 = vpop.f32.mrb[22].mxu0 }
 0x11c   : > { %v617_v48 = vadd.f32 %v616_v7, %v2056_v42  ;;  %v618_v49 = vpop.f32.mrb[23].mxu0 }
 0x11d   : > { %v619_v50 = vadd.f32 %v618_v49, %v2058_v43  ;;  %958 = vmatprep.mubr.f32.mxu1 %v762_v46 }
 0x11e   : > { %959 = vmatmul.mubr.f32.gmra.mrb[20].mxu1 %v761_v47  ;;  %v763_v53 = vmax.f32 %v617_v48, 0.0 }
 0x11f   : > { %v764_v51 = vmax.f32 %v619_v50, 0.0  ;;  %v622_v52 = vpop.f32.mrb[24].mxu0 }
 0x120   : > { %v623_v54 = vadd.f32 %v622_v52, %v2056_v42  ;;  %v624_v55 = vpop.f32.mrb[25].mxu0 }
 0x121   : > { %v625_v56 = vadd.f32 %v624_v55, %v2058_v43  ;;  %963 = vmatprep.mubr.f32.mxu1 %v764_v51 }
 0x122   : > { %964 = vmatmul.mubr.f32.gmra.mrb[22].mxu1 %v763_v53  ;;  %v765_v59 = vmax.f32 %v623_v54, 0.0 }
 0x123   : > { %v766_v57 = vmax.f32 %v625_v56, 0.0  ;;  %v628_v58 = vpop.f32.mrb[26].mxu0 }
 0x124   : > { %v629_v60 = vadd.f32 %v628_v58, %v2056_v42  ;;  %v630_v61 = vpop.f32.mrb[27].mxu0 }
 0x125   : > { %v631_v62 = vadd.f32 %v630_v61, %v2058_v43  ;;  %968 = vmatprep.mubr.f32.mxu1 %v766_v57 }
 0x126   : > { %969 = vmatmul.mubr.f32.gmra.mrb[24].mxu1 %v765_v59  ;;  %v767_v1 = vmax.f32 %v629_v60, 0.0 }
 0x127   : > { %v768_v63 = vmax.f32 %v631_v62, 0.0  ;;  %v634_v0 = vpop.f32.mrb[28].mxu0 }
 0x128   : > { %v635_v2 = vadd.f32 %v634_v0, %v2056_v42  ;;  %v636_v3 = vpop.f32.mrb[29].mxu0 }
 0x129   : > { %v637_v4 = vadd.f32 %v636_v3, %v2058_v43  ;;  %973 = vmatprep.mubr.f32.mxu1 %v768_v63 }
 0x12a   : > { %974 = vmatmul.mubr.f32.gmra.mrb[26].mxu1 %v767_v1  ;;  %v769_v8 = vmax.f32 %v635_v2, 0.0 }
 0x12b   : > { %v770_v5 = vmax.f32 %v637_v4, 0.0  ;;  %v640_v6 = vpop.f32.mrb[30].mxu0 }
 0x12c   : > { %v641_v9 = vadd.f32 %v640_v6, %v2056_v42  ;;  %v642_v10 = vpop.f32.mrb[31].mxu0 }
 0x12d   : > { %v643_v11 = vadd.f32 %v642_v10, %v2058_v43  ;;  %978 = vmatprep.mubr.f32.mxu1 %v770_v5 }
 0x12e   : > { %979 = vmatmul.mubr.f32.gmra.mrb[28].mxu1 %v769_v8  ;;  %v771_v14 = vmax.f32 %v641_v9, 0.0 }
 0x12f   : > { %v772_v12 = vmax.f32 %v643_v11, 0.0  ;;  %v646_v13 = vpop.f32.mrb[32].mxu0 }
 0x130   : > { %v647_v15 = vadd.f32 %v646_v13, %v2056_v42  ;;  %v648_v16 = vpop.f32.mrb[33].mxu0 }
 0x131   : > { %v649_v17 = vadd.f32 %v648_v16, %v2058_v43  ;;  %983 = vmatprep.mubr.f32.mxu1 %v772_v12 }
 0x132   : > { %984 = vmatmul.mubr.f32.gmra.mrb[30].mxu1 %v771_v14  ;;  %v773_v21 = vmax.f32 %v647_v15, 0.0 }
 0x133   : > { %v774_v18 = vmax.f32 %v649_v17, 0.0  ;;  %v652_v19 = vpop.f32.mrb[34].mxu0 }
 0x134   : > { %v653_v22 = vadd.f32 %v652_v19, %v2056_v42  ;;  %v654_v23 = vpop.f32.mrb[35].mxu0 }
 0x135   : > { %v655_v24 = vadd.f32 %v654_v23, %v2058_v43  ;;  %988 = vmatprep.mubr.f32.mxu1 %v774_v18 }
 0x136   : > { %989 = vmatmul.mubr.f32.gmra.mrb[32].mxu1 %v773_v21  ;;  %v775_v27 = vmax.f32 %v653_v22, 0.0 }
 0x137   : > { %v776_v25 = vmax.f32 %v655_v24, 0.0  ;;  %v658_v26 = vpop.f32.mrb[36].mxu0 }
 0x138   : > { %v659_v28 = vadd.f32 %v658_v26, %v2056_v42  ;;  %v660_v20 = vpop.f32.mrb[37].mxu0 }
 0x139   : > { %v661_v29 = vadd.f32 %v660_v20, %v2058_v43  ;;  %993 = vmatprep.mubr.f32.mxu1 %v776_v25 }
 0x13a   : > { %994 = vmatmul.mubr.f32.gmra.mrb[34].mxu1 %v775_v27  ;;  %v777_v32 = vmax.f32 %v659_v28, 0.0 }
 0x13b   : > { %v778_v30 = vmax.f32 %v661_v29, 0.0  ;;  %v664_v31 = vpop.f32.mrb[38].mxu0 }
 0x13c   : > { %v665_v33 = vadd.f32 %v664_v31, %v2056_v42  ;;  %v666_v34 = vpop.f32.mrb[39].mxu0 }
 0x13d   : > { %v667_v35 = vadd.f32 %v666_v34, %v2058_v43  ;;  %998 = vmatprep.mubr.f32.mxu1 %v778_v30 }
 0x13e   : > { %999 = vmatmul.mubr.f32.gmra.mrb[36].mxu1 %v777_v32  ;;  %v779_v38 = vmax.f32 %v665_v33, 0.0 }
 0x13f   : > { %v780_v36 = vmax.f32 %v667_v35, 0.0  ;;  %v670_v37 = vpop.f32.mrb[40].mxu0 }
 0x140   : > { %v671_v39 = vadd.f32 %v670_v37, %v2056_v42  ;;  %v672_v40 = vpop.f32.mrb[41].mxu0 }
 0x141   : > { %v673_v41 = vadd.f32 %v672_v40, %v2058_v43  ;;  %1003 = vmatprep.mubr.f32.mxu1 %v780_v36 }
 0x142   : > { %1004 = vmatmul.mubr.f32.gmra.mrb[38].mxu1 %v779_v38  ;;  %v781_v46 = vmax.f32 %v671_v39, 0.0 }
 0x143   : > { %v782_v44 = vmax.f32 %v673_v41, 0.0  ;;  %v676_v45 = vpop.f32.mrb[42].mxu0 }
 0x144   : > { %v677_v7 = vadd.f32 %v676_v45, %v2056_v42  ;;  %v678_v47 = vpop.f32.mrb[43].mxu0 }
 0x145   : > { %v679_v48 = vadd.f32 %v678_v47, %v2058_v43  ;;  %1008 = vmatprep.mubr.f32.mxu1 %v782_v44 }
 0x146   : > { %1009 = vmatmul.mubr.f32.gmra.mrb[40].mxu1 %v781_v46  ;;  %v783_v51 = vmax.f32 %v677_v7, 0.0 }
 0x147   : > { %v784_v49 = vmax.f32 %v679_v48, 0.0  ;;  %v682_v50 = vpop.f32.mrb[44].mxu0 }
 0x148   : > { %v683_v52 = vadd.f32 %v682_v50, %v2056_v42  ;;  %v684_v53 = vpop.f32.mrb[45].mxu0 }
 0x149   : > { %v685_v54 = vadd.f32 %v684_v53, %v2058_v43  ;;  %1013 = vmatprep.mubr.f32.mxu1 %v784_v49  ;;  %v2127_v49 = vld [vmem:[%s2297_s4] ss:$0 sm:$0xff] }
 0x14a   : > { %1014 = vmatmul.mubr.f32.gmra.mrb[42].mxu1 %v783_v51  ;;  %v785_v57 = vmax.f32 %v683_v52, 0.0 }
 0x14b   : > { %v786_v55 = vmax.f32 %v685_v54, 0.0  ;;  %v688_v56 = vpop.f32.mrb[46].mxu0 }
 0x14c   : > { %v689_v58 = vadd.f32 %v688_v56, %v2056_v42  ;;  %v690_v59 = vpop.f32.mrb[47].mxu0 }
 0x14d   : > { %v691_v60 = vadd.f32 %v690_v59, %v2058_v43  ;;  %1018 = vmatprep.mubr.f32.mxu1 %v786_v55 }
 0x14e   : > { %1019 = vmatmul.mubr.f32.gmra.mrb[44].mxu1 %v785_v57  ;;  %v787_v63 = vmax.f32 %v689_v58, 0.0 }
 0x14f   : > { %v788_v61 = vmax.f32 %v691_v60, 0.0  ;;  %v694_v62 = vpop.f32.mrb[48].mxu0 }
 0x150   : > { %v695_v0 = vadd.f32 %v694_v62, %v2056_v42  ;;  %v696_v1 = vpop.f32.mrb[49].mxu0 }
 0x151   : > { %v697_v2 = vadd.f32 %v696_v1, %v2058_v43  ;;  %1023 = vmatprep.mubr.f32.mxu1 %v788_v61  ;;  %v1102_v61 = vld [vmem:[%s2299_s6] sm:$0xff] }
 0x152   : > { %1024 = vmatmul.mubr.f32.gmra.mrb[46].mxu1 %v787_v63  ;;  %v789_v5 = vmax.f32 %v695_v0, 0.0  ;;  %v1708_v63 = vmov 0  }
 0x153   : > { %v790_v3 = vmax.f32 %v697_v2, 0.0  ;;  %v700_v4 = vpop.f32.mrb[50].mxu0  ;;  %1637 = vset.pattern.permute.xlu0 %v1708_v63  ;;  %v1281_v2 = vld [vmem:[%s2300_s7] sm:$0xff] }
 0x154   : > { %v701_v6 = vadd.f32 %v700_v4, %v2056_v42  ;;  %v702_v8 = vpop.f32.mrb[51].mxu0  ;;  %1105 = vperm.xlu0 %1637, %v1102_v61  }
 0x155   : > { %v703_v9 = vadd.f32 %v702_v8, %v2058_v43  ;;  %1028 = vmatprep.mubr.f32.mxu1 %v790_v3 }
 0x156   : > { %1029 = vmatmul.mubr.f32.gmra.mrb[48].mxu1 %v789_v5  ;;  %v791_v12 = vmax.f32 %v701_v6, 0.0 }
 0x157   : > { %v792_v10 = vmax.f32 %v703_v9, 0.0  ;;  %v706_v11 = vpop.f32.mrb[52].mxu0 }
 0x158   : > { %v707_v13 = vadd.f32 %v706_v11, %v2056_v42  ;;  %v708_v14 = vpop.f32.mrb[53].mxu0  ;;  %1284 = vperm.xlu0 %1637, %v1281_v2  }
 0x159   : > { %v709_v15 = vadd.f32 %v708_v14, %v2058_v43  ;;  %1033 = vmatprep.mubr.f32.mxu1 %v792_v10 }
 0x15a   : > { %1034 = vmatmul.mubr.f32.gmra.mrb[50].mxu1 %v791_v12  ;;  %v793_v18 = vmax.f32 %v707_v13, 0.0 }
 0x15b   : > { %v794_v16 = vmax.f32 %v709_v15, 0.0  ;;  %v712_v17 = vpop.f32.mrb[54].mxu0 }
 0x15c   : > { %v713_v19 = vadd.f32 %v712_v17, %v2056_v42  ;;  %v714_v21 = vpop.f32.mrb[55].mxu0 }
 0x15d   : > { %v715_v22 = vadd.f32 %v714_v21, %v2058_v43  ;;  %1038 = vmatprep.mubr.f32.mxu1 %v794_v16 }
 0x15e   : > { %1039 = vmatmul.mubr.f32.gmra.mrb[52].mxu1 %v793_v18  ;;  %v795_v25 = vmax.f32 %v713_v19, 0.0 }
 0x15f   : > { %v796_v23 = vmax.f32 %v715_v22, 0.0  ;;  %v718_v24 = vpop.f32.mrb[56].mxu0 }
 0x160   : > { %v719_v26 = vadd.f32 %v718_v24, %v2056_v42  ;;  %v720_v27 = vpop.f32.mrb[57].mxu0 }
 0x161   : > { %v721_v28 = vadd.f32 %v720_v27, %v2058_v43  ;;  %1043 = vmatprep.mubr.f32.mxu1 %v796_v23 }
 0x162   : > { %1044 = vmatmul.mubr.f32.gmra.mrb[54].mxu1 %v795_v25  ;;  %v797_v30 = vmax.f32 %v719_v26, 0.0 }
 0x163   : > { %v798_v20 = vmax.f32 %v721_v28, 0.0  ;;  %v724_v29 = vpop.f32.mrb[58].mxu0 }
 0x164   : > { %v725_v31 = vadd.f32 %v724_v29, %v2056_v42  ;;  %v726_v32 = vpop.f32.mrb[59].mxu0 }
 0x165   : > { %v727_v33 = vadd.f32 %v726_v32, %v2058_v43  ;;  %1048 = vmatprep.mubr.f32.mxu1 %v798_v20 }
 0x166   : > { %1049 = vmatmul.mubr.f32.gmra.mrb[56].mxu1 %v797_v30  ;;  %v799_v36 = vmax.f32 %v725_v31, 0.0 }
 0x167   : > { %v800_v34 = vmax.f32 %v727_v33, 0.0  ;;  %v730_v35 = vpop.f32.mrb[60].mxu0 }
 0x168   : > { %v731_v37 = vadd.f32 %v730_v35, %v2056_v42  ;;  %v732_v38 = vpop.f32.mrb[61].mxu0 }
 0x169   : > { %v733_v39 = vadd.f32 %v732_v38, %v2058_v43  ;;  %1053 = vmatprep.mubr.f32.mxu1 %v800_v34 }
 0x16a   : > { %1054 = vmatmul.mubr.f32.gmra.mrb[58].mxu1 %v799_v36  ;;  %v801_v44 = vmax.f32 %v731_v37, 0.0 }
 0x16b   : > { %v802_v40 = vmax.f32 %v733_v39, 0.0  ;;  %v736_v41 = vpop.f32.mrb[62].mxu0 }
 0x16c   : > { %v737_v45 = vadd.f32 %v736_v41, %v2056_v42  ;;  %v738_v46 = vpop.f32.mrb[63].mxu0  ;;  %v2133_v42 = vld [vmem:[%s2298_s5] sm:$0xff] }
 0x16d   : > { %v739_v7 = vadd.f32 %v738_v46, %v2058_v43  ;;  %1058 = vmatprep.mubr.f32.mxu1 %v802_v40  ;;  %1486 = vmatprep.mubr.msk.f32.mxu0 %vm1108_vm1, %v2133_v42 }
 0x16e   : > { %1059 = vmatmul.mubr.f32.gmra.mrb[60].mxu1 %v801_v44  ;;  %v803_v48 = vmax.f32 %v737_v45, 0.0 }
 0x16f   : > { %v804_v47 = vmax.f32 %v739_v7, 0.0 }
 0x171   : > { %1063 = vmatprep.mubr.f32.mxu1 %v804_v47 }
 0x172   : > { %1064 = vmatmul.mubr.f32.gmra.mrb[62].mxu1 %v803_v48 }
 0x1c9   : > { %v910_v50 = vpop.f32.mrb[0].mxu1 }
 0x1ca   : > { %v912_v51 = vpop.f32.mrb[1].mxu1  ;;  %v911_v52 = vadd.f32 %v2127_v49, %v910_v50 }
 0x1cc   : > { %v1069_v55 = vmax.f32 %v911_v52, 0.0 }
 0x1cd   : > { %v915_v53 = vpop.f32.mrb[2].mxu1 }
 0x1ce   : > { %v916_v43 = vadd.f32 %v2127_v49, %v915_v53  ;;  %v917_v54 = vpop.f32.mrb[3].mxu1 }
 0x1d0   : > { %v1070_v56 = vmax.f32 %v916_v43, 0.0 }
 0x1d1   : > { %v920_v57 = vpop.f32.mrb[4].mxu1 }
 0x1d2   : > { %v2138_v58 = vpack.c.bf16 %v1070_v56, %v1069_v55  ;;  %v922_v59 = vpop.f32.mrb[5].mxu1  ;;  %v921_v60 = vadd.f32 %v2127_v49, %v920_v57 }
 0x1d4   : > { %v1071_v3 = vmax.f32 %v921_v60, 0.0 }
 0x1d5   : > { %v925_v62 = vpop.f32.mrb[6].mxu1 }
 0x1d6   : > { %v926_v0 = vadd.f32 %v2127_v49, %v925_v62  ;;  %v927_v1 = vpop.f32.mrb[7].mxu1 }
 0x1d8   : > { %v1072_v4 = vmax.f32 %v926_v0, 0.0 }
 0x1d9   : > { %v930_v5 = vpop.f32.mrb[8].mxu1 }
 0x1da   : > { %v2148_v6 = vpack.c.bf16 %v1072_v4, %v1071_v3  ;;  %v932_v8 = vpop.f32.mrb[9].mxu1  ;;  %v931_v9 = vadd.f32 %v2127_v49, %v930_v5 }
 0x1dc   : > { %v1073_v13 = vmax.f32 %v931_v9, 0.0 }
 0x1dd   : > { %v935_v10 = vpop.f32.mrb[10].mxu1 }
 0x1de   : > { %v936_v11 = vadd.f32 %v2127_v49, %v935_v10  ;;  %v937_v12 = vpop.f32.mrb[11].mxu1 }
 0x1e0   : > { %v1074_v14 = vmax.f32 %v936_v11, 0.0 }
 0x1e1   : > { %v940_v15 = vpop.f32.mrb[12].mxu1 }
 0x1e2   : > { %v2152_v16 = vpack.c.bf16 %v1074_v14, %v1073_v13  ;;  %v942_v17 = vpop.f32.mrb[13].mxu1  ;;  %v941_v18 = vadd.f32 %v2127_v49, %v940_v15 }
 0x1e4   : > { %v1075_v23 = vmax.f32 %v941_v18, 0.0 }
 0x1e5   : > { %v945_v19 = vpop.f32.mrb[14].mxu1 }
 0x1e6   : > { %v946_v21 = vadd.f32 %v2127_v49, %v945_v19  ;;  %v947_v22 = vpop.f32.mrb[15].mxu1 }
 0x1e8   : > { %v1076_v24 = vmax.f32 %v946_v21, 0.0 }
 0x1e9   : > { %v950_v25 = vpop.f32.mrb[16].mxu1 }
 0x1ea   : > { %v2156_v26 = vpack.c.bf16 %v1076_v24, %v1075_v23  ;;  %v952_v27 = vpop.f32.mrb[17].mxu1  ;;  %v951_v28 = vadd.f32 %v2127_v49, %v950_v25 }
 0x1ec   : > { %v1077_v31 = vmax.f32 %v951_v28, 0.0 }
 0x1ed   : > { %v955_v20 = vpop.f32.mrb[18].mxu1 }
 0x1ee   : > { %v956_v29 = vadd.f32 %v2127_v49, %v955_v20  ;;  %v957_v30 = vpop.f32.mrb[19].mxu1 }
 0x1f0   : > { %v1078_v32 = vmax.f32 %v956_v29, 0.0 }
 0x1f1   : > { %v960_v33 = vpop.f32.mrb[20].mxu1 }
 0x1f2   : > { %v2160_v34 = vpack.c.bf16 %v1078_v32, %v1077_v31  ;;  %v962_v35 = vpop.f32.mrb[21].mxu1  ;;  %v961_v36 = vadd.f32 %v2127_v49, %v960_v33 }
 0x1f4   : > { %v1079_v40 = vmax.f32 %v961_v36, 0.0 }
 0x1f5   : > { %v965_v37 = vpop.f32.mrb[22].mxu1 }
 0x1f6   : > { %v966_v38 = vadd.f32 %v2127_v49, %v965_v37  ;;  %v967_v39 = vpop.f32.mrb[23].mxu1 }
 0x1f8   : > { %v1080_v41 = vmax.f32 %v966_v38, 0.0 }
 0x1f9   : > { %v970_v44 = vpop.f32.mrb[24].mxu1 }
 0x1fa   : > { %v2164_v45 = vpack.c.bf16 %v1080_v41, %v1079_v40  ;;  %v972_v46 = vpop.f32.mrb[25].mxu1  ;;  %v971_v7 = vadd.f32 %v2127_v49, %v970_v44 }
 0x1fc   : > { %v1081_v51 = vmax.f32 %v971_v7, 0.0 }
 0x1fd   : > { %v975_v47 = vpop.f32.mrb[26].mxu1 }
 0x1fe   : > { %v976_v48 = vadd.f32 %v2127_v49, %v975_v47  ;;  %v977_v50 = vpop.f32.mrb[27].mxu1 }
 0x200   : > { %v1082_v52 = vmax.f32 %v976_v48, 0.0 }
 0x201   : > { %v980_v53 = vpop.f32.mrb[28].mxu1 }
 0x202   : > { %v2168_v43 = vpack.c.bf16 %v1082_v52, %v1081_v51  ;;  %v982_v54 = vpop.f32.mrb[29].mxu1  ;;  %v981_v55 = vadd.f32 %v2127_v49, %v980_v53 }
 0x204   : > { %v1083_v60 = vmax.f32 %v981_v55, 0.0 }
 0x205   : > { %v985_v56 = vpop.f32.mrb[30].mxu1 }
 0x206   : > { %v986_v57 = vadd.f32 %v2127_v49, %v985_v56  ;;  %v987_v59 = vpop.f32.mrb[31].mxu1 }
 0x208   : > { %v1084_v61 = vmax.f32 %v986_v57, 0.0 }
 0x209   : > { %v990_v62 = vpop.f32.mrb[32].mxu1 }
 0x20a   : > { %v2172_v63 = vpack.c.bf16 %v1084_v61, %v1083_v60  ;;  %v992_v0 = vpop.f32.mrb[33].mxu1  ;;  %v991_v1 = vadd.f32 %v2127_v49, %v990_v62 }
 0x20c   : > { %v1085_v5 = vmax.f32 %v991_v1, 0.0 }
 0x20d   : > { %v995_v2 = vpop.f32.mrb[34].mxu1 }
 0x20e   : > { %v996_v3 = vadd.f32 %v2127_v49, %v995_v2  ;;  %v997_v4 = vpop.f32.mrb[35].mxu1 }
 0x210   : > { %v1086_v8 = vmax.f32 %v996_v3, 0.0 }
 0x211   : > { %v1000_v9 = vpop.f32.mrb[36].mxu1 }
 0x212   : > { %v1548_v11 = vpack.c.bf16 %v1086_v8, %v1085_v5  ;;  %v1002_v12 = vpop.f32.mrb[37].mxu1  ;;  %v1001_v13 = vadd.f32 %v2127_v49, %v1000_v9 }
 0x214   : > { %1550 = vmatprep.subr.msk.bf16.mxu0 %vm2178_vm2, %v1548_v11  ;;  %v1087_v18 = vmax.f32 %v1001_v13, 0.0 }
 0x215   : > { %v1005_v14 = vpop.f32.mrb[38].mxu1  ;;  %1553 = vmatpush3.bf16.xpose.msk.msra.mxu0 %vm2178_vm2, %v2138_v58 }
 0x216   : > { %v1006_v15 = vadd.f32 %v2127_v49, %v1005_v14  ;;  %v1007_v17 = vpop.f32.mrb[39].mxu1 }
 0x217   : > { %v1106_v17 = vpop.permute.xlu0 %1105 }
 0x218   : > { %v1088_v19 = vmax.f32 %v1006_v15, 0.0 }
 0x219   : > { %v1010_v21 = vpop.f32.mrb[40].mxu1 }
 0x21a   : > { %v1554_v22 = vpack.c.bf16 %v1088_v19, %v1087_v18  ;;  %v1012_v23 = vpop.f32.mrb[41].mxu1  ;;  %v1011_v24 = vadd.f32 %v2127_v49, %v1010_v21 }
 0x21b   : > { %v1285_v21 = vpop.permute.xlu0 %1284 }
 0x21c   : > { %1556 = vmatprep.subr.msk.bf16.mxu0 %vm2178_vm2, %v1554_v22  ;;  %v1089_v28 = vmax.f32 %v1011_v24, 0.0 }
 0x21d   : > { %v1015_v25 = vpop.f32.mrb[42].mxu1  ;;  %1559 = vmatpush3.bf16.xpose.msk.msra.mxu0 %vm2178_vm2, %v2148_v6 }
 0x21e   : > { %v1016_v58 = vadd.f32 %v2127_v49, %v1015_v25  ;;  %v1017_v27 = vpop.f32.mrb[43].mxu1 }
 0x220   : > { %v1090_v20 = vmax.f32 %v1016_v58, 0.0 }
 0x221   : > { %v1020_v29 = vpop.f32.mrb[44].mxu1 }
 0x222   : > { %v1560_v30 = vpack.c.bf16 %v1090_v20, %v1089_v28  ;;  %v1022_v31 = vpop.f32.mrb[45].mxu1  ;;  %v1021_v32 = vadd.f32 %v2127_v49, %v1020_v29 }
 0x224   : > { %1562 = vmatprep.subr.msk.bf16.mxu0 %vm2178_vm2, %v1560_v30  ;;  %v1091_v36 = vmax.f32 %v1021_v32, 0.0 }
 0x225   : > { %v1025_v33 = vpop.f32.mrb[46].mxu1  ;;  %1565 = vmatpush3.bf16.xpose.msk.msra.mxu0 %vm2178_vm2, %v2152_v16 }
 0x226   : > { %v1026_v6 = vadd.f32 %v2127_v49, %v1025_v33  ;;  %v1027_v35 = vpop.f32.mrb[47].mxu1 }
 0x228   : > { %v1092_v37 = vmax.f32 %v1026_v6, 0.0 }
 0x229   : > { %v1030_v38 = vpop.f32.mrb[48].mxu1 }
 0x22a   : > { %v1566_v39 = vpack.c.bf16 %v1092_v37, %v1091_v36  ;;  %v1032_v40 = vpop.f32.mrb[49].mxu1  ;;  %v1031_v41 = vadd.f32 %v2127_v49, %v1030_v38 }
 0x22c   : > { %1568 = vmatprep.subr.msk.bf16.mxu0 %vm2178_vm2, %v1566_v39  ;;  %v1093_v7 = vmax.f32 %v1031_v41, 0.0 }
 0x22d   : > { %v1035_v44 = vpop.f32.mrb[50].mxu1  ;;  %1571 = vmatpush3.bf16.xpose.msk.msra.mxu0 %vm2178_vm2, %v2156_v26 }
 0x22e   : > { %v1036_v16 = vadd.f32 %v2127_v49, %v1035_v44  ;;  %v1037_v46 = vpop.f32.mrb[51].mxu1 }
 0x230   : > { %v1094_v47 = vmax.f32 %v1036_v16, 0.0 }
 0x231   : > { %v1040_v48 = vpop.f32.mrb[52].mxu1 }
 0x232   : > { %v1572_v50 = vpack.c.bf16 %v1094_v47, %v1093_v7  ;;  %v1042_v51 = vpop.f32.mrb[53].mxu1  ;;  %v1041_v52 = vadd.f32 %v2127_v49, %v1040_v48 }
 0x234   : > { %1574 = vmatprep.subr.msk.bf16.mxu0 %vm2178_vm2, %v1572_v50  ;;  %v1095_v55 = vmax.f32 %v1041_v52, 0.0 }
 0x235   : > { %v1045_v53 = vpop.f32.mrb[54].mxu1  ;;  %1577 = vmatpush3.bf16.xpose.msk.msra.mxu0 %vm2178_vm2, %v2160_v34 }
 0x236   : > { %v1046_v26 = vadd.f32 %v2127_v49, %v1045_v53  ;;  %v1047_v54 = vpop.f32.mrb[55].mxu1 }
 0x238   : > { %v1096_v56 = vmax.f32 %v1046_v26, 0.0 }
 0x239   : > { %v1050_v57 = vpop.f32.mrb[56].mxu1 }
 0x23a   : > { %v1578_v59 = vpack.c.bf16 %v1096_v56, %v1095_v55  ;;  %v1052_v60 = vpop.f32.mrb[57].mxu1  ;;  %v1051_v61 = vadd.f32 %v2127_v49, %v1050_v57 }
 0x23c   : > { %1580 = vmatprep.subr.msk.bf16.mxu0 %vm2178_vm2, %v1578_v59  ;;  %v1097_v1 = vmax.f32 %v1051_v61, 0.0 }
 0x23d   : > { %v1055_v62 = vpop.f32.mrb[58].mxu1  ;;  %1583 = vmatpush3.bf16.xpose.msk.msra.mxu0 %vm2178_vm2, %v2164_v45 }
 0x23e   : > { %v1056_v34 = vadd.f32 %v2127_v49, %v1055_v62  ;;  %v1057_v0 = vpop.f32.mrb[59].mxu1 }
 0x240   : > { %v1098_v2 = vmax.f32 %v1056_v34, 0.0 }
 0x241   : > { %v1060_v3 = vpop.f32.mrb[60].mxu1 }
 0x242   : > { %v1584_v4 = vpack.c.bf16 %v1098_v2, %v1097_v1  ;;  %v1062_v5 = vpop.f32.mrb[61].mxu1  ;;  %v1061_v8 = vadd.f32 %v2127_v49, %v1060_v3 }
 0x244   : > { %1586 = vmatprep.subr.msk.bf16.mxu0 %vm2178_vm2, %v1584_v4  ;;  %v1099_v12 = vmax.f32 %v1061_v8, 0.0 }
 0x245   : > { %v1065_v9 = vpop.f32.mrb[62].mxu1  ;;  %1589 = vmatpush3.bf16.xpose.msk.msra.mxu0 %vm2178_vm2, %v2168_v43 }
 0x246   : > { %v1066_v45 = vadd.f32 %v2127_v49, %v1065_v9  ;;  %v1067_v11 = vpop.f32.mrb[63].mxu1 }
 0x248   : > { %v1100_v13 = vmax.f32 %v1066_v45, 0.0 }
 0x24a   : > { %v1590_v14 = vpack.c.bf16 %v1100_v13, %v1099_v12 }
 0x24c   : > { %1592 = vmatprep.subr.msk.bf16.mxu0 %vm2178_vm2, %v1590_v14 }
 0x24d   : > { %1595 = vmatpush3.bf16.xpose.msk.msra.mxu0 %vm2178_vm2, %v2172_v63 }
 0x254   : > { %1487 = vmatmul.mubr.msk.f32.vlgmr.msra.gmra.mrb[64].mxu0 %vm1108_vm1, %v2133_v42 }
 0x327   : > { %v1274_v15 = vpop.f32.mrb[64].mxu0 }
 0x328   : > { %v1275_v43 = vadd.f32 %v1274_v15, %v1106_v17  ;;  %v1276_v18 = vpop.f32.mrb[65].mxu0 }
 0x329   : > { %v1277_v49 = vadd.f32 %v1276_v18, %v1106_v17 }
 0x32a   : > { %1638 = vtanh.f32 %v1275_v43 }
 0x32b   : > { %1640 = vtanh.f32 %v1277_v49 }
 0x332   : > { %1298 = sbr.rel (!%p1793_p5) target bundleno = 852 (0x354), region = 56 }
 0x334   : > { %v1639_v19 = vpop.eup %1638 }
 0x335   : > { %v1641_v22 = vpop.eup %1640  ;;  %v1287_v23 = vmul.f32 %v1639_v19, %v1285_v21 }
 0x336   : > { %v1288_v24 = vmul.f32 %v1641_v22, %v1285_v21 }
 0x337   : > { %1289 = vst [vmem:[%s311_s24] sm:$0xff] %v1287_v23 }
 0x338   : > { %1290 = vst [vmem:[%s311_s24 + $0x8] sm:$0xff] %v1288_v24 }
 0x339   : > { %s2313_s20 = smov (!%p1301_p11, %s1300_s20), 2 }
 0x33a   : > { %s2244_s10 = sshll.u32 %s2313_s20, 7 }
 0x33b   : > { %s1305_s12 = ssub.s32 256, %s2244_s10 }
 0x33c   : > { %1306 = vsyncadd %s2239_s25, %s1305_s12  ;;  %p1447_p12 = scmp.ne.s32.totalorder %s2244_s10, 0  ;;  %s1453_s13 = sshll.u32 %s1776_s9, 8 }
 0x33d   : > { %s2253_s18 = scalar_lea.hbm %s2301_s8, %s1453_s13  ;;  %s1312_s19 = sshll.u32 %s311_s24, 4  ;;  %s1313_s19 = int_to_ptr.vmem [resolvable:$true] %s1312_s19 }
 0x33e   : > { %s1642_s23 = scalar_lea.vmem %s1313_s19, %s2244_s10  ;;  %s1709_s21 = smov [#allocation2]  }
 0x33f   : > { %p1643_p13 = scmp.ne.s32.totalorder %s1313_s19, %s1642_s23  ;;  %s1646_s22 = sshll.u32 %s1709_s21, 4  ;;  %s1647_s22 = int_to_ptr.vmem [resolvable:$false] %s1646_s22 }
 0x340   : > { %s1648_s26 = scalar_lea.vmem %s1647_s22, 512  ;;  %p1649_p2 = scmp.lt.s32.totalorder %s1313_s19, %s1647_s22 }
 0x341   : > { %p1644_p0 = pnand %p1643_p13, %p1447_p12  ;;  %p1650_p3 = scmp.lt.s32.totalorder %s1648_s26, %s1642_s23 }
 0x343   : > { %p1645_p1 = pneg %p1644_p0  ;;  %p1651_p4 = por %p1650_p3, %p1649_p2 }
 0x345   : > { %p1652_p5 = pnand %p1651_p4, %p1645_p1 }
 0x347   : > { %1655 = shalt.err (!%p1652_p5)
}
 0x348   : > { %s1656_s9 = scalar_lea.hbm %s2253_s18, %s2244_s10  ;;  %s1660_s12 = scalar_lea.hbm %s2301_s8, 384 }
 0x349   : > { %p1657_p7 = scmp.ne.s32.totalorder %s2253_s18, %s1656_s9  ;;  %p1661_p10 = scmp.lt.u32.totalorder %s2253_s18, %s2301_s8 }
 0x34a   : > { %p1662_p11 = scmp.lt.u32.totalorder %s1660_s12, %s1656_s9  ;;  %p1664_p0 = scmp.lt.u32.totalorder %s1656_s9, %s2253_s18 }
 0x34b   : > { %p1658_p8 = pnand %p1657_p7, %p1447_p12 }
 0x34c   : > { %p1663_p13 = por %p1662_p11, %p1661_p10 }
 0x34d   : > { %p1659_p9 = pneg %p1658_p8 }
 0x34e   : > { %p1665_p1 = por %p1664_p0, %p1663_p13 }
 0x350   : > { %p1666_p2 = pnand %p1665_p1, %p1659_p9 }
 0x352   : > { %1669 = shalt.err (!%p1666_p2)
}
 0x353   : > { %1315 = dma.vmem_to_hbm [thread:$0]  (%p1447_p12), %s1313_s19, %s2244_s10, %s2253_s18, %s2239_s25  }
 0x354 PF: > { %p1601_p3 = scmp.ge.s32.totalorder %s1704_s30, 2  ;;  %s1324_s15 = sand.u32 1, %s1692_s27  }
 0x355   : > { %s1325_s23 = scalar_lea.sflag [#allocation3], %s1324_s15 }
 0x356   : > { %p1598_p4 = pnand %p1601_p3, %p1797_p6 }
 0x358   : > { %1687 = dma.done.wait (!%p1598_p4), %s1325_s23, 256  }
 0x359   : > { %1689 = vsyncadd (!%p1598_p4), %s1325_s23, 4294967040  ;;  %p18_p5 = scmp.ge.s32.totalorder %s1780_s11, 4   ;;  %s2306_s27 = smov %s1696_s28 }
 0x35a   : > { %s2307_s28 = smov %s1700_s29  ;;  %s2308_s29 = smov %s1791_s14 }
 0x35b   : > { %s2309_s30 = smov %s1780_s11  ;;  %20 = sbr.rel (!%p18_p5) target bundleno = 3 (0x3), region = 87 }
 0x362   :  { %1330 = vsyncpa [#allocation3], 1 }
 0x363   :  { %1332 = vsyncpa [#allocation3 + $0x1], 1 }

</bundles_post_ra>
